<compile_context>
chip_gen: v6e
topology: v6e:2x2x1
jax: 0.10.0
libtpu: 0.0.40
codegen_flags: <defaults>
</compile_context>

<pallas_src>
import functools

import jax
import jax.numpy as jnp
from jax.experimental import pallas as pl
from jax.experimental.pallas import tpu as pltpu


def policy_net_kernel(x_ref, w1_ref, w2_ref, out_ref):
    # fc1 + bias (bias folded into last row of w1 against x's ones column), then ReLU.
    h = jnp.dot(x_ref[...], w1_ref[...], preferred_element_type=jnp.float32)
    h = jnp.maximum(h, 0.0)                                   # (block_b, H+1); col H == 1.0

    # fc2 + bias (bias folded into last row of w2 against h's always-1 trailing column).
    logits = jnp.dot(h.astype(w2_ref.dtype), w2_ref[...],
                     preferred_element_type=jnp.float32)      # (block_b, A_pad)

    # Numerically stable softmax along dim=1, all f32.  Padded action lanes carry a
    # -1e30 bias so exp() underflows to exactly 0 and they drop out of max/sum.
    m = jnp.max(logits, axis=1, keepdims=True)
    e = jnp.exp(logits - m)
    denom = jnp.sum(e, axis=1, keepdims=True)
    out_ref[...] = (e * pl.reciprocal(denom, approx=True)).astype(out_ref.dtype)


def policy_net_forward(x, w1, b1, w2, b2, *, block_b=256, compute_dtype=jnp.float32):
    """x: (B, state_dim).  w1: (state_dim, H), b1: (1, H), w2: (H, A), b2: (1, A).
    Returns softmax probabilities (B, A) in f32."""
    B, S = x.shape
    H = w1.shape[1]
    A = w2.shape[1]

    block_b = max(8, min(block_b, ((B + 7) // 8) * 8))   # multiple of 8 sublanes
    grid_b = pl.cdiv(B, block_b)
    B_pad = grid_b * block_b
    A_pad = ((A + 127) // 128) * 128                     # lane-dense output width

    f32 = jnp.float32
    # Augment x with a ones column; it drives both bias folds.
    x_aug = jnp.concatenate([x.astype(f32), jnp.ones((B, 1), f32)], axis=1)
    if B_pad != B:
        x_aug = jnp.pad(x_aug, ((0, B_pad - B), (0, 0)))

    # w1_aug = [[w1, 0], [b1, 1]]  ->  (x_aug @ w1_aug)[:, H] == 1 before & after ReLU.
    w1_aug = jnp.zeros((S + 1, H + 1), f32)
    w1_aug = w1_aug.at[:S, :H].set(w1.astype(f32))
    w1_aug = w1_aug.at[S, :H].set(b1.reshape(-1).astype(f32))
    w1_aug = w1_aug.at[S, H].set(1.0)

    # w2_aug = [[w2 | 0], [b2 | -1e30]]  ->  padded-lane logits ~ -1e30 -> exp == 0.
    w2_aug = jnp.zeros((H + 1, A_pad), f32)
    w2_aug = w2_aug.at[:H, :A].set(w2.astype(f32))
    w2_aug = w2_aug.at[H, :].set(jnp.float32(-1e30))
    w2_aug = w2_aug.at[H, :A].set(b2.reshape(-1).astype(f32))

    x_aug = x_aug.astype(compute_dtype)
    w1_aug = w1_aug.astype(compute_dtype)
    w2_aug = w2_aug.astype(compute_dtype)

    out = pl.pallas_call(
        policy_net_kernel,
        out_shape=jax.ShapeDtypeStruct((B_pad, A_pad), jnp.float32),
        grid=(grid_b,),
        in_specs=[
            pl.BlockSpec((block_b, S + 1), lambda i: (i, 0)),   # batch-tiled activations
            pl.BlockSpec((S + 1, H + 1), lambda i: (0, 0)),     # fc1 weights+bias (resident)
            pl.BlockSpec((H + 1, A_pad), lambda i: (0, 0)),     # fc2 weights+bias (resident)
        ],
        out_specs=pl.BlockSpec((block_b, A_pad), lambda i: (i, 0)),
        compiler_params=pltpu.CompilerParams(
            dimension_semantics=("parallel",)),   # batch tiles shard across v7x's 2 TCs
    )(x_aug, w1_aug, w2_aug)

    return out[:B, :A]


def init_params(key, state_dim, hidden_dim, action_dim):
    """Deterministic synthetic init matching torch.nn.Linear shapes (pre-transposed)."""
    k1, k2, k3, k4 = jax.random.split(key, 4)
    bound1 = 1.0 / jnp.sqrt(state_dim)
    bound2 = 1.0 / jnp.sqrt(hidden_dim)
    w1 = jax.random.uniform(k1, (state_dim, hidden_dim), jnp.float32, -bound1, bound1)
    b1 = jax.random.uniform(k2, (1, hidden_dim), jnp.float32, -bound1, bound1)
    w2 = jax.random.uniform(k3, (hidden_dim, action_dim), jnp.float32, -bound2, bound2)
    b2 = jax.random.uniform(k4, (1, action_dim), jnp.float32, -bound2, bound2)
    return w1, b1, w2, b2


if __name__ == "__main__":
    # CartPole-like policy net; batch = a whole rollout processed in a single call.
    batch, state_dim, hidden_dim, action_dim = 512, 4, 32, 2

    key = jax.random.PRNGKey(0)
    kx, kp = jax.random.split(key)
    x = jax.random.normal(kx, (batch, state_dim), jnp.float32)
    w1, b1, w2, b2 = init_params(kp, state_dim, hidden_dim, action_dim)

    fwd = jax.jit(functools.partial(policy_net_forward, block_b=256))
    probs = jax.block_until_ready(fwd(x, w1, b1, w2, b2))

    # Pure-JAX reference of the same math.
    h_ref = jnp.maximum(x @ w1 + b1, 0.0)
    logits_ref = h_ref @ w2 + b2
    ref = jax.nn.softmax(logits_ref, axis=1)

    assert probs.shape == (batch, action_dim)
    # approx (EUP) reciprocal -> ~1e-4 relative error; use 1e-3 tolerances.
    assert jnp.allclose(probs, ref, atol=1e-3), "mismatch vs reference"
    assert jnp.allclose(jnp.sum(probs, axis=1), 1.0, atol=1e-3), "softmax rows must sum to 1"

    print("KERNEL_OK")
</pallas_src>

<mosaic_0001>
module attributes {stable_mosaic.version = 11 : i64} {
  func.func @policy_net_kernel(%arg0: i32, %arg1: memref<256x5xf32, #tpu.memory_space<vmem>>, %arg2: memref<5x33xf32, #tpu.memory_space<vmem>>, %arg3: memref<33x128xf32, #tpu.memory_space<vmem>>, %arg4: memref<256x128xf32, #tpu.memory_space<vmem>>) attributes {dimension_semantics = [#tpu.dimension_semantics<parallel>], iteration_bounds = array<i64: 2>, scalar_prefetch = 0 : i64, scratch_operands = 0 : i64, tpu.core_type = #tpu.core_type<tc>, window_params = [{transform_indices = @transform_0, window_bounds = array<i64: 256, 5>}, {pipeline_mode = #tpu.pipeline_mode<synchronous>, transform_indices = @transform_1, window_bounds = array<i64: 5, 33>}, {pipeline_mode = #tpu.pipeline_mode<synchronous>, transform_indices = @transform_2, window_bounds = array<i64: 33, 128>}, {transform_indices = @transform_3, window_bounds = array<i64: 256, 128>}]} {
    %c0 = arith.constant 0 : index
    %c0_0 = arith.constant 0 : index
    %0 = vector.load %arg1[%c0, %c0_0] : memref<256x5xf32, #tpu.memory_space<vmem>>, vector<256x5xf32>
    %c0_1 = arith.constant 0 : index
    %c0_2 = arith.constant 0 : index
    %1 = vector.load %arg2[%c0_1, %c0_2] : memref<5x33xf32, #tpu.memory_space<vmem>>, vector<5x33xf32>
    %cst = arith.constant dense<0.000000e+00> : vector<256x33xf32>
    %2 = tpu.matmul %0, %1, %cst {dimension_numbers = #tpu.dot_dimension_numbers<[1], [0], [0], [1], [0, 0, 1, 1], [], []>} : vector<256x5xf32>, vector<5x33xf32>, vector<256x33xf32> -> vector<256x33xf32>
    %cst_3 = arith.constant 0.000000e+00 : f32
    %3 = vector.broadcast %cst_3 : f32 to vector<256x33xf32>
    %4 = arith.maximumf %2, %3 : vector<256x33xf32>
    %c0_4 = arith.constant 0 : index
    %c0_5 = arith.constant 0 : index
    %5 = vector.load %arg3[%c0_4, %c0_5] : memref<33x128xf32, #tpu.memory_space<vmem>>, vector<33x128xf32>
    %cst_6 = arith.constant dense<0.000000e+00> : vector<256x128xf32>
    %6 = tpu.matmul %4, %5, %cst_6 {dimension_numbers = #tpu.dot_dimension_numbers<[1], [0], [0], [1], [0, 0, 1, 1], [], []>} : vector<256x33xf32>, vector<33x128xf32>, vector<256x128xf32> -> vector<256x128xf32>
    %cst_7 = arith.constant dense<0xFF800000> : vector<256xf32>
    %7 = vector.multi_reduction <maximumf>, %6, %cst_7 [1] : vector<256x128xf32> to vector<256xf32>
    %8 = vector.shape_cast %7 : vector<256xf32> to vector<256x1xf32>
    %9 = vector.broadcast %8 : vector<256x1xf32> to vector<256x128xf32>
    %10 = arith.subf %6, %9 : vector<256x128xf32>
    %11 = math.exp %10 : vector<256x128xf32>
    %cst_8 = arith.constant dense<0.000000e+00> : vector<256xf32>
    %12 = vector.multi_reduction <add>, %11, %cst_8 [1] : vector<256x128xf32> to vector<256xf32>
    %13 = vector.shape_cast %12 : vector<256xf32> to vector<256x1xf32>
    %14 = tpu.reciprocal %13 {approx = true} : vector<256x1xf32> -> vector<256x1xf32>
    %15 = vector.broadcast %14 : vector<256x1xf32> to vector<256x128xf32>
    %16 = arith.mulf %11, %15 : vector<256x128xf32>
    %c0_9 = arith.constant 0 : index
    %c0_10 = arith.constant 0 : index
    %17 = vector.load %arg4[%c0_9, %c0_10] : memref<256x128xf32, #tpu.memory_space<vmem>>, vector<256x128xf32>
    tpu.vector_store %arg4[%c0_9, %c0_10], %16 {strides = array<i32>} : memref<256x128xf32, #tpu.memory_space<vmem>>, vector<256x128xf32>,
    return
  }
  func.func @transform_0(%arg0: i32) -> (i32, i32) {
    %c0_i32 = arith.constant 0 : i32
    %c0_i32_0 = arith.constant 0 : i32
    return %arg0, %c0_i32 : i32, i32
  }
  func.func @transform_1(%arg0: i32) -> (i32, i32) {
    %c0_i32 = arith.constant 0 : i32
    %c0_i32_0 = arith.constant 0 : i32
    %c0_i32_1 = arith.constant 0 : i32
    return %c0_i32, %c0_i32_0 : i32, i32
  }
  func.func @transform_2(%arg0: i32) -> (i32, i32) {
    %c0_i32 = arith.constant 0 : i32
    %c0_i32_0 = arith.constant 0 : i32
    %c0_i32_1 = arith.constant 0 : i32
    return %c0_i32, %c0_i32_0 : i32, i32
  }
  func.func @transform_3(%arg0: i32) -> (i32, i32) {
    %c0_i32 = arith.constant 0 : i32
    %c0_i32_0 = arith.constant 0 : i32
    return %arg0, %c0_i32 : i32, i32
  }
}

</mosaic_0001>

<bundles_post_ra>
// kernel: policy_net_forward.1
= control target key start
LH: loop header
LB: loop body
LE: loop exit
PB: predicated region body
PF: predicated region fallthrough
CT: control target
= control target key end

     0   :  { %s1701_s12 = smov 0   ;;  %s2135_s0 = inlined_call_operand.vmem [shape: f32[512,5], index: 0, kind: input, shape index: {}]   ;;  %s2136_s1 = inlined_call_operand.vmem [shape: f32[5,33], index: 1, kind: input, shape index: {}]   ;;  %s2137_s2 = inlined_call_operand.vmem [shape: f32[33,128], index: 2, kind: input, shape index: {}]   ;;  %s2138_s3 = inlined_call_operand.vmem [shape: f32[512,128], index: 3, kind: output, shape index: {}]  }
   0x1 LB: > { %s1272_s13 = sadd.s32 4294967295, %s1679_s12   ;;  %p1276_p0 = scmp.ge.s32.totalorder %s1679_s12, 1  ;;  %s1679_s12 = sphi %s1701_s12, %s13_s12  }
   0x2   : > { %p138_p1 = scmp.lt.s32.totalorder %s1679_s12, 3 }
   0x4   : > { %p139_p2 = pnand %p1276_p0, %p138_p1 }
   0x5   : > { %s1277_s16 = sshll.u32 (!%p139_p2), %s1272_s13, 5 }
   0x6   : > { %142 = sbr.rel (%p139_p2) target bundleno = 784 (0x310), region = 32  ;;  %p163_p3 = scmp.lt.s32.totalorder (!%p139_p2), %s1277_s16, 63 }
   0xb   : > { %v206_v0 = vld [vmem:[%s2136_s1] sm:$0x1f]  ;;  %vm304_vm0 = vcmask 1044480   ;;  %vm667_vm1 = vcmask 1040384   ;;  %s2140_s16 = smov (!%p163_p3, %s1277_s16), 63  ;;  %v568_v2 = vld [vmem:[%s2137_s2 + $0x18] sm:$0xff] }
   0xc   : > { %1419 = vmatprep.subr.msk.mxu0 %vm304_vm0, %v206_v0  ;;  %v569_v1 = vld [vmem:[%s2137_s2 + $0x20] sm:$0x1]  ;;  %s1278_s21 = sshll.u32 %s2140_s16, 3  ;;  %vm207_vm2 = vcmask 39936   ;;  %v567_v3 = vld [vmem:[%s2137_s2 + $0x10] sm:$0xff]  ;;  %v566_v4 = vld [vmem:[%s2137_s2 + $0x8] sm:$0xff] }
   0xd   : > { %1420 = vmatpush3.msk.msra.mxu0 %vm304_vm0, %v206_v0  ;;  %1527 = vmatprep.subr.msk.mxu1 %vm667_vm1, %v569_v1  ;;  %s1732_s26 = scalar_lea.vmem %s2135_s0, %s1278_s21  ;;  %v565_v9 = vld [vmem:[%s2137_s2] sm:$0xff]  ;;  %vm570_vm3 = vcmask 269312   ;;  %s2066_s6 = scalar_lea.vmem %s2138_s3, %s1278_s21 }
   0xe   : > { %1469 = vmatprep.subr.msk.mxu0 %vm667_vm1, %v569_v1  ;;  %1532 = vmatpush3.msk.msra.mxu1 %vm667_vm1, %v569_v1  ;;  %v174_v5 = vld [vmem:[%s1732_s26] sm:$0xff]  ;;  %v175_v6 = vld [vmem:[%s1732_s26 + $0x8] sm:$0xff]  ;;  %v176_v7 = vld [vmem:[%s1732_s26 + $0x10] sm:$0xff] }
   0xf   : > { %1528 = vmatprep.subr.mxu1 %v568_v2  ;;  %1421 = vmatprep.mubr.msk.f32.mxu0 %vm207_vm2, %v174_v5  ;;  %v177_v8 = vld [vmem:[%s1732_s26 + $0x18] sm:$0xff]  ;;  %v178_v10 = vld [vmem:[%s1732_s26 + $0x20] sm:$0xff]  ;;  %v179_v11 = vld [vmem:[%s1732_s26 + $0x28] sm:$0xff] }
  0x10   : > { %1533 = vmatpush3.msra.mxu1 %v568_v2  ;;  %1422 = vmatmul.mubr.msk.f32.vlgmr.msra.gmra.mxu0 %vm207_vm2, %v175_v6  ;;  %v180_v12 = vld [vmem:[%s1732_s26 + $0x30] sm:$0xff]  ;;  %v181_v13 = vld [vmem:[%s1732_s26 + $0x38] sm:$0xff]  ;;  %v182_v14 = vld [vmem:[%s1732_s26 + $0x40] sm:$0xff] }
  0x11   : > { %1529 = vmatprep.subr.mxu1 %v567_v3  ;;  %1424 = vmatprep.mubr.msk.f32.mxu0 %vm207_vm2, %v176_v7  ;;  %v183_v15 = vld [vmem:[%s1732_s26 + $0x48] sm:$0xff]  ;;  %v184_v16 = vld [vmem:[%s1732_s26 + $0x50] sm:$0xff]  ;;  %v185_v17 = vld [vmem:[%s1732_s26 + $0x58] sm:$0xff] }
  0x12   : > { %1534 = vmatpush3.msra.mxu1 %v567_v3  ;;  %1470 = vmatpush3.msk.msra.mxu0 %vm667_vm1, %v569_v1  ;;  %v186_v18 = vld [vmem:[%s1732_s26 + $0x60] sm:$0xff]  ;;  %v187_v19 = vld [vmem:[%s1732_s26 + $0x68] sm:$0xff]  ;;  %v188_v20 = vld [vmem:[%s1732_s26 + $0x70] sm:$0xff] }
  0x13   : > { %1530 = vmatprep.subr.mxu1 %v566_v4  ;;  %1471 = vmatprep.subr.mxu0 %v568_v2  ;;  %v189_v21 = vld [vmem:[%s1732_s26 + $0x78] sm:$0xff]  ;;  %v190_v22 = vld [vmem:[%s1732_s26 + $0x80] sm:$0xff]  ;;  %v191_v23 = vld [vmem:[%s1732_s26 + $0x88] sm:$0xff] }
  0x14   : > { %1535 = vmatpush3.msra.mxu1 %v566_v4  ;;  %1472 = vmatpush3.msra.mxu0 %v568_v2  ;;  %v192_v24 = vld [vmem:[%s1732_s26 + $0x90] sm:$0xff]  ;;  %v193_v25 = vld [vmem:[%s1732_s26 + $0x98] sm:$0xff]  ;;  %v194_v26 = vld [vmem:[%s1732_s26 + $0xa0] sm:$0xff] }
  0x15   : > { %1531 = vmatprep.subr.mxu1 %v565_v9  ;;  %1425 = vmatmul.mubr.msk.f32.gmra.mxu0 %vm207_vm2, %v177_v8  ;;  %v195_v27 = vld [vmem:[%s1732_s26 + $0xa8] sm:$0xff]  ;;  %v196_v28 = vld [vmem:[%s1732_s26 + $0xb0] sm:$0xff]  ;;  %v197_v29 = vld [vmem:[%s1732_s26 + $0xb8] sm:$0xff] }
  0x16   : > { %1536 = vmatpush3.msra.mxu1 %v565_v9  ;;  %1473 = vmatprep.subr.mxu0 %v567_v3  ;;  %v198_v30 = vld [vmem:[%s1732_s26 + $0xc0] sm:$0xff]  ;;  %v199_v31 = vld [vmem:[%s1732_s26 + $0xc8] sm:$0xff]  ;;  %v200_v32 = vld [vmem:[%s1732_s26 + $0xd0] sm:$0xff] }
  0x17   : > { %1427 = vmatprep.mubr.msk.f32.mxu0 %vm207_vm2, %v178_v10  ;;  %1474 = vmatpush3.msra.mxu0 %v567_v3  ;;  %v201_v33 = vld [vmem:[%s1732_s26 + $0xd8] sm:$0xff]  ;;  %v202_v34 = vld [vmem:[%s1732_s26 + $0xe0] sm:$0xff]  ;;  %v203_v35 = vld [vmem:[%s1732_s26 + $0xe8] sm:$0xff] }
  0x18   : > { %1475 = vmatprep.subr.mxu0 %v566_v4  ;;  %v204_v36 = vld [vmem:[%s1732_s26 + $0xf0] sm:$0xff]  ;;  %v205_v37 = vld [vmem:[%s1732_s26 + $0xf8] sm:$0xff] }
  0x19   : > { %1476 = vmatpush3.msra.mxu0 %v566_v4 }
  0x1a   : > { %1428 = vmatmul.mubr.msk.f32.gmra.mxu0 %vm207_vm2, %v179_v11  ;;  %1477 = vmatprep.subr.mxu0 %v565_v9 }
  0x1b   : > { %1430 = vmatprep.mubr.msk.f32.mxu0 %vm207_vm2, %v180_v12  ;;  %1478 = vmatpush3.msra.mxu0 %v565_v9 }
  0x1e   : > { %1431 = vmatmul.mubr.msk.f32.gmra.mxu0 %vm207_vm2, %v181_v13 }
  0x1f   : > { %1433 = vmatprep.mubr.msk.f32.mxu0 %vm207_vm2, %v182_v14 }
  0x22   : > { %1434 = vmatmul.mubr.msk.f32.gmra.mxu0 %vm207_vm2, %v183_v15 }
  0x23   : > { %1436 = vmatprep.mubr.msk.f32.mxu0 %vm207_vm2, %v184_v16 }
  0x26   : > { %1437 = vmatmul.mubr.msk.f32.gmra.mxu0 %vm207_vm2, %v185_v17 }
  0x27   : > { %1439 = vmatprep.mubr.msk.f32.mxu0 %vm207_vm2, %v186_v18 }
  0x2a   : > { %1440 = vmatmul.mubr.msk.f32.gmra.mxu0 %vm207_vm2, %v187_v19 }
  0x2b   : > { %1442 = vmatprep.mubr.msk.f32.mxu0 %vm207_vm2, %v188_v20 }
  0x2e   : > { %1443 = vmatmul.mubr.msk.f32.gmra.mxu0 %vm207_vm2, %v189_v21 }
  0x2f   : > { %1445 = vmatprep.mubr.msk.f32.mxu0 %vm207_vm2, %v190_v22 }
  0x32   : > { %1446 = vmatmul.mubr.msk.f32.gmra.mxu0 %vm207_vm2, %v191_v23 }
  0x33   : > { %1448 = vmatprep.mubr.msk.f32.mxu0 %vm207_vm2, %v192_v24 }
  0x36   : > { %1449 = vmatmul.mubr.msk.f32.gmra.mxu0 %vm207_vm2, %v193_v25 }
  0x37   : > { %1451 = vmatprep.mubr.msk.f32.mxu0 %vm207_vm2, %v194_v26 }
  0x3a   : > { %1452 = vmatmul.mubr.msk.f32.gmra.mxu0 %vm207_vm2, %v195_v27 }
  0x3b   : > { %1454 = vmatprep.mubr.msk.f32.mxu0 %vm207_vm2, %v196_v28 }
  0x3e   : > { %1455 = vmatmul.mubr.msk.f32.gmra.mxu0 %vm207_vm2, %v197_v29 }
  0x3f   : > { %1457 = vmatprep.mubr.msk.f32.mxu0 %vm207_vm2, %v198_v30 }
  0x42   : > { %1458 = vmatmul.mubr.msk.f32.gmra.mxu0 %vm207_vm2, %v199_v31 }
  0x43   : > { %1460 = vmatprep.mubr.msk.f32.mxu0 %vm207_vm2, %v200_v32 }
  0x46   : > { %1461 = vmatmul.mubr.msk.f32.gmra.mxu0 %vm207_vm2, %v201_v33 }
  0x47   : > { %1463 = vmatprep.mubr.msk.f32.mxu0 %vm207_vm2, %v202_v34 }
  0x4a   : > { %1464 = vmatmul.mubr.msk.f32.gmra.mxu0 %vm207_vm2, %v203_v35 }
  0x4b   : > { %1466 = vmatprep.mubr.msk.f32.mxu0 %vm207_vm2, %v204_v36 }
  0x4e   : > { %1467 = vmatmul.mubr.msk.f32.gmra.mxu0 %vm207_vm2, %v205_v37 }
  0xd0   : > { %v1423_v38 = vpop.f32.mrf.mxu0 }
  0xd1   : > { %v534_v41 = vmax.f32 %v1423_v38, 0.0 }
  0xd2   : > { %v374_v39 = vpop.f32.mrf.mxu0 }
  0xd3   : > { %v533_v40 = vmax.f32 %v374_v39, 0.0 }
  0xd5   : > { %v1426_v42 = vpop.f32.mrf.mxu0  ;;  %1479 = vmatprep.mubr.msk.f32.mxu0 %vm570_vm3, %v533_v40 }
  0xd6   : > { %1480 = vmatmul.mubr.msk.f32.vlgmr.msra.gmra.mxu0 %vm570_vm3, %v534_v41  ;;  %v536_v45 = vmax.f32 %v1426_v42, 0.0 }
  0xd7   : > { %v384_v43 = vpop.f32.mrf.mxu0 }
  0xd8   : > { %v535_v44 = vmax.f32 %v384_v43, 0.0 }
  0xda   : > { %v1429_v46 = vpop.f32.mrf.mxu0  ;;  %1482 = vmatprep.mubr.msk.f32.mxu1 %vm570_vm3, %v535_v44 }
  0xdb   : > { %v538_v47 = vmax.f32 %v1429_v46, 0.0  ;;  %1483 = vmatmul.mubr.msk.f32.vlgmr.msra.gmra.mxu1 %vm570_vm3, %v536_v45 }
  0xdc   : > { %v394_v48 = vpop.f32.mrf.mxu0 }
  0xdd   : > { %v537_v49 = vmax.f32 %v394_v48, 0.0 }
  0xde   : > { %v1432_v50 = vpop.f32.mrf.mxu0 }
  0xdf   : > { %1485 = vmatprep.mubr.msk.f32.mxu1 %vm570_vm3, %v537_v49  ;;  %v540_v51 = vmax.f32 %v1432_v50, 0.0 }
  0xe0   : > { %v404_v52 = vpop.f32.mrf.mxu0  ;;  %1486 = vmatmul.mubr.msk.f32.gmra.mxu1 %vm570_vm3, %v538_v47 }
  0xe1   : > { %v539_v53 = vmax.f32 %v404_v52, 0.0 }
  0xe2   : > { %v1435_v54 = vpop.f32.mrf.mxu0 }
  0xe3   : > { %1488 = vmatprep.mubr.msk.f32.mxu1 %vm570_vm3, %v539_v53  ;;  %v542_v55 = vmax.f32 %v1435_v54, 0.0 }
  0xe4   : > { %v414_v56 = vpop.f32.mrf.mxu0  ;;  %1489 = vmatmul.mubr.msk.f32.gmra.mxu1 %vm570_vm3, %v540_v51 }
  0xe5   : > { %v541_v57 = vmax.f32 %v414_v56, 0.0 }
  0xe6   : > { %v1438_v58 = vpop.f32.mrf.mxu0 }
  0xe7   : > { %1491 = vmatprep.mubr.msk.f32.mxu1 %vm570_vm3, %v541_v57  ;;  %v544_v59 = vmax.f32 %v1438_v58, 0.0 }
  0xe8   : > { %v424_v60 = vpop.f32.mrf.mxu0  ;;  %1492 = vmatmul.mubr.msk.f32.gmra.mxu1 %vm570_vm3, %v542_v55 }
  0xe9   : > { %v543_v61 = vmax.f32 %v424_v60, 0.0 }
  0xea   : > { %v1441_v62 = vpop.f32.mrf.mxu0 }
  0xeb   : > { %1494 = vmatprep.mubr.msk.f32.mxu1 %vm570_vm3, %v543_v61  ;;  %v546_v63 = vmax.f32 %v1441_v62, 0.0 }
  0xec   : > { %v434_v0 = vpop.f32.mrf.mxu0  ;;  %1495 = vmatmul.mubr.msk.f32.gmra.mxu1 %vm570_vm3, %v544_v59 }
  0xed   : > { %v545_v1 = vmax.f32 %v434_v0, 0.0 }
  0xee   : > { %v1444_v2 = vpop.f32.mrf.mxu0 }
  0xef   : > { %1497 = vmatprep.mubr.msk.f32.mxu1 %vm570_vm3, %v545_v1  ;;  %v548_v3 = vmax.f32 %v1444_v2, 0.0 }
  0xf0   : > { %v444_v4 = vpop.f32.mrf.mxu0  ;;  %1498 = vmatmul.mubr.msk.f32.gmra.mxu1 %vm570_vm3, %v546_v63 }
  0xf1   : > { %v547_v5 = vmax.f32 %v444_v4, 0.0 }
  0xf2   : > { %v1447_v6 = vpop.f32.mrf.mxu0 }
  0xf3   : > { %1500 = vmatprep.mubr.msk.f32.mxu1 %vm570_vm3, %v547_v5  ;;  %v550_v7 = vmax.f32 %v1447_v6, 0.0 }
  0xf4   : > { %v454_v8 = vpop.f32.mrf.mxu0  ;;  %1501 = vmatmul.mubr.msk.f32.gmra.mxu1 %vm570_vm3, %v548_v3 }
  0xf5   : > { %v549_v9 = vmax.f32 %v454_v8, 0.0 }
  0xf6   : > { %v1450_v10 = vpop.f32.mrf.mxu0 }
  0xf7   : > { %1503 = vmatprep.mubr.msk.f32.mxu1 %vm570_vm3, %v549_v9  ;;  %v552_v11 = vmax.f32 %v1450_v10, 0.0 }
  0xf8   : > { %v464_v12 = vpop.f32.mrf.mxu0  ;;  %1504 = vmatmul.mubr.msk.f32.gmra.mxu1 %vm570_vm3, %v550_v7 }
  0xf9   : > { %v551_v13 = vmax.f32 %v464_v12, 0.0 }
  0xfa   : > { %v1453_v14 = vpop.f32.mrf.mxu0 }
  0xfb   : > { %1506 = vmatprep.mubr.msk.f32.mxu1 %vm570_vm3, %v551_v13  ;;  %v554_v15 = vmax.f32 %v1453_v14, 0.0 }
  0xfc   : > { %v474_v16 = vpop.f32.mrf.mxu0  ;;  %1507 = vmatmul.mubr.msk.f32.gmra.mxu1 %vm570_vm3, %v552_v11 }
  0xfd   : > { %v553_v17 = vmax.f32 %v474_v16, 0.0 }
  0xfe   : > { %v1456_v18 = vpop.f32.mrf.mxu0 }
  0xff   : > { %1509 = vmatprep.mubr.msk.f32.mxu1 %vm570_vm3, %v553_v17  ;;  %v556_v19 = vmax.f32 %v1456_v18, 0.0 }
 0x100   : > { %v484_v20 = vpop.f32.mrf.mxu0  ;;  %1510 = vmatmul.mubr.msk.f32.gmra.mxu1 %vm570_vm3, %v554_v15 }
 0x101   : > { %v555_v21 = vmax.f32 %v484_v20, 0.0 }
 0x102   : > { %v1459_v22 = vpop.f32.mrf.mxu0 }
 0x103   : > { %1512 = vmatprep.mubr.msk.f32.mxu1 %vm570_vm3, %v555_v21  ;;  %v558_v23 = vmax.f32 %v1459_v22, 0.0 }
 0x104   : > { %v494_v24 = vpop.f32.mrf.mxu0  ;;  %1513 = vmatmul.mubr.msk.f32.gmra.mxu1 %vm570_vm3, %v556_v19 }
 0x105   : > { %v557_v25 = vmax.f32 %v494_v24, 0.0 }
 0x106   : > { %v1462_v26 = vpop.f32.mrf.mxu0 }
 0x107   : > { %1515 = vmatprep.mubr.msk.f32.mxu1 %vm570_vm3, %v557_v25  ;;  %v560_v27 = vmax.f32 %v1462_v26, 0.0 }
 0x108   : > { %v504_v28 = vpop.f32.mrf.mxu0  ;;  %1516 = vmatmul.mubr.msk.f32.gmra.mxu1 %vm570_vm3, %v558_v23 }
 0x109   : > { %v559_v29 = vmax.f32 %v504_v28, 0.0 }
 0x10a   : > { %v1465_v30 = vpop.f32.mrf.mxu0 }
 0x10b   : > { %1518 = vmatprep.mubr.msk.f32.mxu1 %vm570_vm3, %v559_v29  ;;  %v562_v31 = vmax.f32 %v1465_v30, 0.0 }
 0x10c   : > { %v514_v32 = vpop.f32.mrf.mxu0  ;;  %1519 = vmatmul.mubr.msk.f32.gmra.mxu1 %vm570_vm3, %v560_v27 }
 0x10d   : > { %v561_v33 = vmax.f32 %v514_v32, 0.0 }
 0x10e   : > { %v1468_v34 = vpop.f32.mrf.mxu0 }
 0x10f   : > { %1521 = vmatprep.mubr.msk.f32.mxu1 %vm570_vm3, %v561_v33  ;;  %v564_v35 = vmax.f32 %v1468_v34, 0.0 }
 0x110   : > { %v524_v36 = vpop.f32.mrf.mxu0  ;;  %1522 = vmatmul.mubr.msk.f32.gmra.mxu1 %vm570_vm3, %v562_v31 }
 0x111   : > { %v563_v37 = vmax.f32 %v524_v36, 0.0 }
 0x113   : > { %1524 = vmatprep.mubr.msk.f32.mxu1 %vm570_vm3, %v563_v37 }
 0x114   : > { %1525 = vmatmul.mubr.msk.f32.gmra.mxu1 %vm570_vm3, %v564_v35 }
 0x196   : > { %v1837_v38 = vpop.f32.mrf.mxu0 }
 0x197   : > { %898 = vmax.xlane.f32.xlu0 %v1837_v38 }
 0x198   : > { %v1840_v39 = vpop.f32.mrf.mxu0 }
 0x19b   : > { %v1842_v40 = vpop.f32.mrf.mxu1  ;;  %896 = vmax.xlane.f32.xlu0 %v1840_v39 }
 0x19c   : > { %902 = vmax.xlane.f32.xlu1 %v1842_v40 }
 0x19d   : > { %v1846_v41 = vpop.f32.mrf.mxu1 }
 0x1a0   : > { %v1848_v42 = vpop.f32.mrf.mxu1  ;;  %900 = vmax.xlane.f32.xlu1 %v1846_v41 }
 0x1a2   : > { %v1851_v43 = vpop.f32.mrf.mxu1 }
 0x1a3   : > { %904 = vmax.xlane.f32.xlu0 %v1851_v43 }
 0x1a4   : > { %v1854_v44 = vpop.f32.mrf.mxu1  ;;  %906 = vmax.xlane.f32.xlu1 %v1848_v42 }
 0x1a6   : > { %v1857_v45 = vpop.f32.mrf.mxu1 }
 0x1a7   : > { %908 = vmax.xlane.f32.xlu0 %v1857_v45 }
 0x1a8   : > { %v1860_v46 = vpop.f32.mrf.mxu1  ;;  %910 = vmax.xlane.f32.xlu1 %v1854_v44 }
 0x1aa   : > { %v1863_v47 = vpop.f32.mrf.mxu1 }
 0x1ab   : > { %912 = vmax.xlane.f32.xlu0 %v1863_v47 }
 0x1ac   : > { %v1866_v48 = vpop.f32.mrf.mxu1  ;;  %914 = vmax.xlane.f32.xlu1 %v1860_v46 }
 0x1ae   : > { %v1869_v49 = vpop.f32.mrf.mxu1 }
 0x1af   : > { %916 = vmax.xlane.f32.xlu0 %v1869_v49 }
 0x1b0   : > { %v1872_v50 = vpop.f32.mrf.mxu1  ;;  %918 = vmax.xlane.f32.xlu1 %v1866_v48 }
 0x1b2   : > { %v1875_v51 = vpop.f32.mrf.mxu1 }
 0x1b3   : > { %920 = vmax.xlane.f32.xlu0 %v1875_v51 }
 0x1b4   : > { %v1878_v52 = vpop.f32.mrf.mxu1  ;;  %922 = vmax.xlane.f32.xlu1 %v1872_v50 }
 0x1b6   : > { %v1881_v53 = vpop.f32.mrf.mxu1 }
 0x1b7   : > { %924 = vmax.xlane.f32.xlu0 %v1881_v53 }
 0x1b8   : > { %v1884_v54 = vpop.f32.mrf.mxu1  ;;  %926 = vmax.xlane.f32.xlu1 %v1878_v52 }
 0x1ba   : > { %v1887_v55 = vpop.f32.mrf.mxu1 }
 0x1bb   : > { %928 = vmax.xlane.f32.xlu0 %v1887_v55 }
 0x1bc   : > { %v1890_v56 = vpop.f32.mrf.mxu1  ;;  %930 = vmax.xlane.f32.xlu1 %v1884_v54 }
 0x1be   : > { %v1893_v57 = vpop.f32.mrf.mxu1 }
 0x1bf   : > { %932 = vmax.xlane.f32.xlu0 %v1893_v57 }
 0x1c0   : > { %v1896_v58 = vpop.f32.mrf.mxu1  ;;  %934 = vmax.xlane.f32.xlu1 %v1890_v56 }
 0x1c2   : > { %v1899_v59 = vpop.f32.mrf.mxu1 }
 0x1c3   : > { %936 = vmax.xlane.f32.xlu0 %v1899_v59 }
 0x1c4   : > { %v1902_v60 = vpop.f32.mrf.mxu1  ;;  %938 = vmax.xlane.f32.xlu1 %v1896_v58 }
 0x1c6   : > { %v1905_v61 = vpop.f32.mrf.mxu1 }
 0x1c7   : > { %940 = vmax.xlane.f32.xlu0 %v1905_v61 }
 0x1c8   : > { %v1908_v62 = vpop.f32.mrf.mxu1  ;;  %942 = vmax.xlane.f32.xlu1 %v1902_v60 }
 0x1ca   : > { %v1911_v63 = vpop.f32.mrf.mxu1 }
 0x1cb   : > { %944 = vmax.xlane.f32.xlu0 %v1911_v63 }
 0x1cc   : > { %v1914_v0 = vpop.f32.mrf.mxu1  ;;  %946 = vmax.xlane.f32.xlu1 %v1908_v62 }
 0x1ce   : > { %v1917_v1 = vpop.f32.mrf.mxu1 }
 0x1cf   : > { %948 = vmax.xlane.f32.xlu0 %v1917_v1 }
 0x1d0   : > { %v1920_v2 = vpop.f32.mrf.mxu1  ;;  %950 = vmax.xlane.f32.xlu1 %v1914_v0 }
 0x1d2   : > { %v1923_v3 = vpop.f32.mrf.mxu1 }
 0x1d3   : > { %952 = vmax.xlane.f32.xlu0 %v1923_v3 }
 0x1d4   : > { %v1926_v4 = vpop.f32.mrf.mxu1  ;;  %954 = vmax.xlane.f32.xlu1 %v1920_v2 }
 0x1d6   : > { %v1929_v5 = vpop.f32.mrf.mxu1 }
 0x1d7   : > { %956 = vmax.xlane.f32.xlu0 %v1929_v5 }
 0x1d8   : > { %958 = vmax.xlane.f32.xlu1 %v1926_v4 }
 0x220   : > { %v899_v6 = vpop.xlane.xlu0 %898 }
 0x221   : > { %v961_v7 = vsub.f32 %v1837_v38, %v899_v6 }
 0x223   : > { %v994_v8 = vmul.f32 1.442695, %v961_v7 }
 0x224   : > { %v897_v10 = vpop.xlane.xlu0 %896 }
 0x225   : > { %v903_v9 = vpop.xlane.xlu1 %902  ;;  %1545 = vpow2.f32 %v994_v8  ;;  %v960_v12 = vsub.f32 %v1840_v39, %v897_v10 }
 0x226   : > { %v963_v11 = vsub.f32 %v1842_v40, %v903_v9 }
 0x227   : > { %v992_v14 = vmul.f32 1.442695, %v960_v12 }
 0x228   : > { %v998_v13 = vmul.f32 1.442695, %v963_v11 }
 0x229   : > { %v901_v15 = vpop.xlane.xlu1 %900 }
 0x22a   : > { %1547 = vpow2.f32 %v998_v13  ;;  %v962_v16 = vsub.f32 %v1846_v41, %v901_v15 }
 0x22b   : > { %1549 = vpow2.f32 %v992_v14 }
 0x22c   : > { %v905_v17 = vpop.xlane.xlu0 %904  ;;  %v996_v18 = vmul.f32 1.442695, %v962_v16 }
 0x22d   : > { %v964_v19 = vsub.f32 %v1851_v43, %v905_v17  ;;  %v907_v20 = vpop.xlane.xlu1 %906 }
 0x22e   : > { %1551 = vpow2.f32 %v996_v18  ;;  %v965_v21 = vsub.f32 %v1848_v42, %v907_v20 }
 0x22f   : > { %v1000_v22 = vmul.f32 1.442695, %v964_v19 }
 0x230   : > { %v909_v23 = vpop.xlane.xlu0 %908  ;;  %v1002_v24 = vmul.f32 1.442695, %v965_v21 }
 0x231   : > { %v966_v25 = vsub.f32 %v1857_v45, %v909_v23  ;;  %v911_v26 = vpop.xlane.xlu1 %910 }
 0x232   : > { %1553 = vpow2.f32 %v1002_v24  ;;  %v967_v27 = vsub.f32 %v1854_v44, %v911_v26  ;;  %v1941_v28 = vpop.eup %1545 }
 0x233   : > { %1555 = vpow2.f32 %v1000_v22  ;;  %v1004_v29 = vmul.f32 1.442695, %v966_v25  ;;  %1058 = vadd.xlane.f32.xlu1 %v1941_v28 }
 0x234   : > { %v913_v30 = vpop.xlane.xlu0 %912  ;;  %v1006_v31 = vmul.f32 1.442695, %v967_v27 }
 0x235   : > { %v968_v32 = vsub.f32 %v1863_v47, %v913_v30  ;;  %v915_v33 = vpop.xlane.xlu1 %914 }
 0x236   : > { %1557 = vpow2.f32 %v1006_v31  ;;  %v969_v34 = vsub.f32 %v1860_v46, %v915_v33 }
 0x237   : > { %v1946_v35 = vpop.eup %1547  ;;  %1559 = vpow2.f32 %v1004_v29  ;;  %v1008_v36 = vmul.f32 1.442695, %v968_v32 }
 0x238   : > { %v917_v37 = vpop.xlane.xlu0 %916  ;;  %v1948_v38 = vpop.eup %1549  ;;  %v1010_v39 = vmul.f32 1.442695, %v969_v34  ;;  %1062 = vadd.xlane.f32.xlu1 %v1946_v35 }
 0x239   : > { %v970_v40 = vsub.f32 %v1869_v49, %v917_v37  ;;  %1056 = vadd.xlane.f32.xlu0 %v1948_v38  ;;  %v919_v41 = vpop.xlane.xlu1 %918 }
 0x23a   : > { %1561 = vpow2.f32 %v1010_v39  ;;  %v971_v42 = vsub.f32 %v1866_v48, %v919_v41 }
 0x23b   : > { %v1954_v43 = vpop.eup %1551  ;;  %1563 = vpow2.f32 %v1008_v36  ;;  %v1012_v44 = vmul.f32 1.442695, %v970_v40 }
 0x23c   : > { %v921_v45 = vpop.xlane.xlu0 %920  ;;  %v1014_v46 = vmul.f32 1.442695, %v971_v42 }
 0x23d   : > { %v972_v47 = vsub.f32 %v1875_v51, %v921_v45  ;;  %1060 = vadd.xlane.f32.xlu0 %v1954_v43  ;;  %v923_v6 = vpop.xlane.xlu1 %922 }
 0x23e   : > { %1565 = vpow2.f32 %v1014_v46  ;;  %v973_v49 = vsub.f32 %v1872_v50, %v923_v6 }
 0x23f   : > { %v1959_v7 = vpop.eup %1553  ;;  %1567 = vpow2.f32 %v1012_v44  ;;  %v1016_v8 = vmul.f32 1.442695, %v972_v47 }
 0x240   : > { %v925_v9 = vpop.xlane.xlu0 %924  ;;  %v1961_v48 = vpop.eup %1555  ;;  %v1018_v10 = vmul.f32 1.442695, %v973_v49  ;;  %1066 = vadd.xlane.f32.xlu1 %v1959_v7 }
 0x241   : > { %v974_v11 = vsub.f32 %v1881_v53, %v925_v9  ;;  %1064 = vadd.xlane.f32.xlu0 %v1961_v48  ;;  %v927_v51 = vpop.xlane.xlu1 %926 }
 0x242   : > { %1569 = vpow2.f32 %v1018_v10  ;;  %v975_v12 = vsub.f32 %v1878_v52, %v927_v51 }
 0x243   : > { %v1967_v13 = vpop.eup %1557  ;;  %1571 = vpow2.f32 %v1016_v8  ;;  %v1020_v50 = vmul.f32 1.442695, %v974_v11 }
 0x244   : > { %v929_v14 = vpop.xlane.xlu0 %928  ;;  %v1969_v15 = vpop.eup %1559  ;;  %v1022_v16 = vmul.f32 1.442695, %v975_v12  ;;  %1070 = vadd.xlane.f32.xlu1 %v1967_v13 }
 0x245   : > { %v976_v17 = vsub.f32 %v1887_v55, %v929_v14  ;;  %1068 = vadd.xlane.f32.xlu0 %v1969_v15  ;;  %v931_v53 = vpop.xlane.xlu1 %930 }
 0x246   : > { %1573 = vpow2.f32 %v1022_v16  ;;  %v977_v18 = vsub.f32 %v1884_v54, %v931_v53 }
 0x247   : > { %v1975_v19 = vpop.eup %1561  ;;  %1575 = vpow2.f32 %v1020_v50  ;;  %v1024_v52 = vmul.f32 1.442695, %v976_v17 }
 0x248   : > { %v933_v20 = vpop.xlane.xlu0 %932  ;;  %v1977_v21 = vpop.eup %1563  ;;  %v1026_v22 = vmul.f32 1.442695, %v977_v18  ;;  %1074 = vadd.xlane.f32.xlu1 %v1975_v19 }
 0x249   : > { %v978_v23 = vsub.f32 %v1893_v57, %v933_v20  ;;  %1072 = vadd.xlane.f32.xlu0 %v1977_v21  ;;  %v935_v55 = vpop.xlane.xlu1 %934 }
 0x24a   : > { %1577 = vpow2.f32 %v1026_v22  ;;  %v979_v24 = vsub.f32 %v1890_v56, %v935_v55 }
 0x24b   : > { %v1983_v25 = vpop.eup %1565  ;;  %1579 = vpow2.f32 %v1024_v52  ;;  %v1028_v54 = vmul.f32 1.442695, %v978_v23 }
 0x24c   : > { %v937_v26 = vpop.xlane.xlu0 %936  ;;  %v1985_v27 = vpop.eup %1567  ;;  %v1030_v29 = vmul.f32 1.442695, %v979_v24  ;;  %1078 = vadd.xlane.f32.xlu1 %v1983_v25 }
 0x24d   : > { %v980_v30 = vsub.f32 %v1899_v59, %v937_v26  ;;  %1076 = vadd.xlane.f32.xlu0 %v1985_v27  ;;  %v939_v57 = vpop.xlane.xlu1 %938 }
 0x24e   : > { %1581 = vpow2.f32 %v1030_v29  ;;  %v981_v31 = vsub.f32 %v1896_v58, %v939_v57 }
 0x24f   : > { %v1991_v32 = vpop.eup %1569  ;;  %1583 = vpow2.f32 %v1028_v54  ;;  %v1032_v56 = vmul.f32 1.442695, %v980_v30 }
 0x250   : > { %v941_v33 = vpop.xlane.xlu0 %940  ;;  %v1993_v34 = vpop.eup %1571  ;;  %v1034_v36 = vmul.f32 1.442695, %v981_v31  ;;  %1082 = vadd.xlane.f32.xlu1 %v1991_v32 }
 0x251   : > { %v982_v37 = vsub.f32 %v1905_v61, %v941_v33  ;;  %1080 = vadd.xlane.f32.xlu0 %v1993_v34  ;;  %v943_v59 = vpop.xlane.xlu1 %942 }
 0x252   : > { %1585 = vpow2.f32 %v1034_v36  ;;  %v983_v39 = vsub.f32 %v1902_v60, %v943_v59 }
 0x253   : > { %v1999_v40 = vpop.eup %1573  ;;  %1587 = vpow2.f32 %v1032_v56  ;;  %v1036_v58 = vmul.f32 1.442695, %v982_v37 }
 0x254   : > { %v945_v41 = vpop.xlane.xlu0 %944  ;;  %v2001_v42 = vpop.eup %1575  ;;  %v1038_v44 = vmul.f32 1.442695, %v983_v39  ;;  %1086 = vadd.xlane.f32.xlu1 %v1999_v40 }
 0x255   : > { %v984_v45 = vsub.f32 %v1911_v63, %v945_v41  ;;  %1084 = vadd.xlane.f32.xlu0 %v2001_v42  ;;  %v947_v61 = vpop.xlane.xlu1 %946 }
 0x256   : > { %1589 = vpow2.f32 %v1038_v44  ;;  %v985_v46 = vsub.f32 %v1908_v62, %v947_v61 }
 0x257   : > { %v2007_v47 = vpop.eup %1577  ;;  %1591 = vpow2.f32 %v1036_v58  ;;  %v1040_v60 = vmul.f32 1.442695, %v984_v45 }
 0x258   : > { %v949_v6 = vpop.xlane.xlu0 %948  ;;  %v2009_v49 = vpop.eup %1579  ;;  %v1042_v8 = vmul.f32 1.442695, %v985_v46  ;;  %1090 = vadd.xlane.f32.xlu1 %v2007_v47 }
 0x259   : > { %v986_v9 = vsub.f32 %v1917_v1, %v949_v6  ;;  %1088 = vadd.xlane.f32.xlu0 %v2009_v49  ;;  %v951_v63 = vpop.xlane.xlu1 %950 }
 0x25a   : > { %1593 = vpow2.f32 %v1042_v8  ;;  %v987_v10 = vsub.f32 %v1914_v0, %v951_v63 }
 0x25b   : > { %v2015_v11 = vpop.eup %1581  ;;  %1595 = vpow2.f32 %v1040_v60  ;;  %v1044_v62 = vmul.f32 1.442695, %v986_v9 }
 0x25c   : > { %v953_v51 = vpop.xlane.xlu0 %952  ;;  %v2017_v12 = vpop.eup %1583  ;;  %v1046_v50 = vmul.f32 1.442695, %v987_v10  ;;  %1094 = vadd.xlane.f32.xlu1 %v2015_v11 }
 0x25d   : > { %v988_v14 = vsub.f32 %v1923_v3, %v953_v51  ;;  %1092 = vadd.xlane.f32.xlu0 %v2017_v12  ;;  %v955_v1 = vpop.xlane.xlu1 %954 }
 0x25e   : > { %1597 = vpow2.f32 %v1046_v50  ;;  %v989_v16 = vsub.f32 %v1920_v2, %v955_v1 }
 0x25f   : > { %v2023_v17 = vpop.eup %1585  ;;  %1599 = vpow2.f32 %v1044_v62  ;;  %v1048_v0 = vmul.f32 1.442695, %v988_v14 }
 0x260   : > { %v957_v53 = vpop.xlane.xlu0 %956  ;;  %v2025_v18 = vpop.eup %1587  ;;  %v1050_v52 = vmul.f32 1.442695, %v989_v16  ;;  %1098 = vadd.xlane.f32.xlu1 %v2023_v17 }
 0x261   : > { %v990_v20 = vsub.f32 %v1929_v5, %v957_v53  ;;  %1096 = vadd.xlane.f32.xlu0 %v2025_v18  ;;  %v959_v3 = vpop.xlane.xlu1 %958 }
 0x262   : > { %1601 = vpow2.f32 %v1050_v52  ;;  %v991_v22 = vsub.f32 %v1926_v4, %v959_v3 }
 0x263   : > { %v2031_v23 = vpop.eup %1589  ;;  %1603 = vpow2.f32 %v1048_v0  ;;  %v1052_v2 = vmul.f32 1.442695, %v990_v20 }
 0x264   : > { %v2033_v55 = vpop.eup %1591  ;;  %v1054_v24 = vmul.f32 1.442695, %v991_v22  ;;  %1102 = vadd.xlane.f32.xlu1 %v2031_v23 }
 0x265   : > { %1100 = vadd.xlane.f32.xlu0 %v2033_v55 }
 0x266   : > { %1605 = vpow2.f32 %v1054_v24 }
 0x267   : > { %v2037_v5 = vpop.eup %1593  ;;  %1607 = vpow2.f32 %v1052_v2 }
 0x268   : > { %v2039_v54 = vpop.eup %1595  ;;  %1106 = vadd.xlane.f32.xlu1 %v2037_v5 }
 0x269   : > { %1104 = vadd.xlane.f32.xlu0 %v2039_v54 }
 0x26b   : > { %v2043_v4 = vpop.eup %1597 }
 0x26c   : > { %v2045_v26 = vpop.eup %1599  ;;  %1110 = vadd.xlane.f32.xlu1 %v2043_v4 }
 0x26d   : > { %1108 = vadd.xlane.f32.xlu0 %v2045_v26 }
 0x26f   : > { %v2049_v29 = vpop.eup %1601 }
 0x270   : > { %v2051_v30 = vpop.eup %1603  ;;  %1114 = vadd.xlane.f32.xlu1 %v2049_v29 }
 0x271   : > { %1112 = vadd.xlane.f32.xlu0 %v2051_v30 }
 0x273   : > { %v2055_v57 = vpop.eup %1605 }
 0x274   : > { %v2057_v31 = vpop.eup %1607  ;;  %1118 = vadd.xlane.f32.xlu1 %v2055_v57 }
 0x275   : > { %1116 = vadd.xlane.f32.xlu0 %v2057_v31 }
 0x2bc   : > { %v1059_v56 = vpop.xlane.xlu1 %1058 }
 0x2bd   : > { %1609 = vrcp.f32 %v1059_v56 }
 0x2c1   : > { %v1063_v33 = vpop.xlane.xlu1 %1062 }
 0x2c2   : > { %1611 = vrcp.f32 %v1063_v33  ;;  %v1057_v36 = vpop.xlane.xlu0 %1056 }
 0x2c3   : > { %1613 = vrcp.f32 %v1057_v36 }
 0x2c6   : > { %v1061_v37 = vpop.xlane.xlu0 %1060 }
 0x2c7   : > { %1615 = vrcp.f32 %v1061_v37 }
 0x2c9   : > { %v1067_v59 = vpop.xlane.xlu1 %1066 }
 0x2ca   : > { %1617 = vrcp.f32 %v1067_v59  ;;  %v1065_v39 = vpop.xlane.xlu0 %1064  ;;  %v1610_v58 = vpop.eup %1609 }
 0x2cb   : > { %1619 = vrcp.f32 %v1065_v39  ;;  %v1153_v41 = vmul.f32 %v1610_v58, %v1941_v28 }
 0x2cd   : > { %v1071_v44 = vpop.xlane.xlu1 %1070  ;;  %1185 = vst [vmem:[%s2066_s6 + $0x8] sm:$0xff] %v1153_v41 }
 0x2ce   : > { %1621 = vrcp.f32 %v1071_v44  ;;  %v1069_v45 = vpop.xlane.xlu0 %1068 }
 0x2cf   : > { %v1612_v61 = vpop.eup %1611  ;;  %1623 = vrcp.f32 %v1069_v45 }
 0x2d0   : > { %v1614_v46 = vpop.eup %1613  ;;  %v1155_v60 = vmul.f32 %v1612_v61, %v1946_v35 }
 0x2d1   : > { %v1152_v6 = vmul.f32 %v1614_v46, %v1948_v38  ;;  %v1075_v8 = vpop.xlane.xlu1 %1074 }
 0x2d2   : > { %1187 = vst [vmem:[%s2066_s6 + $0x18] sm:$0xff] %v1155_v60  ;;  %1625 = vrcp.f32 %v1075_v8  ;;  %v1073_v9 = vpop.xlane.xlu0 %1072 }
 0x2d3   : > { %1184 = vst [vmem:[%s2066_s6] sm:$0xff] %v1152_v6  ;;  %1627 = vrcp.f32 %v1073_v9 }
 0x2d4   : > { %v1616_v28 = vpop.eup %1615 }
 0x2d5   : > { %v1154_v63 = vmul.f32 %v1616_v28, %v1954_v43  ;;  %v1079_v10 = vpop.xlane.xlu1 %1078 }
 0x2d6   : > { %1629 = vrcp.f32 %v1079_v10  ;;  %v1077_v62 = vpop.xlane.xlu0 %1076 }
 0x2d7   : > { %v1618_v51 = vpop.eup %1617  ;;  %1186 = vst [vmem:[%s2066_s6 + $0x10] sm:$0xff] %v1154_v63  ;;  %1631 = vrcp.f32 %v1077_v62 }
 0x2d8   : > { %v1620_v35 = vpop.eup %1619  ;;  %v1157_v38 = vmul.f32 %v1618_v51, %v1959_v7 }
 0x2d9   : > { %v1156_v50 = vmul.f32 %v1620_v35, %v1961_v48  ;;  %v1083_v14 = vpop.xlane.xlu1 %1082 }
 0x2da   : > { %1189 = vst [vmem:[%s2066_s6 + $0x28] sm:$0xff] %v1157_v38  ;;  %1633 = vrcp.f32 %v1083_v14  ;;  %v1081_v1 = vpop.xlane.xlu0 %1080 }
 0x2db   : > { %v1622_v16 = vpop.eup %1621  ;;  %1188 = vst [vmem:[%s2066_s6 + $0x20] sm:$0xff] %v1156_v50  ;;  %1635 = vrcp.f32 %v1081_v1 }
 0x2dc   : > { %v1624_v43 = vpop.eup %1623  ;;  %v1159_v0 = vmul.f32 %v1622_v16, %v1967_v13 }
 0x2dd   : > { %v1158_v53 = vmul.f32 %v1624_v43, %v1969_v15  ;;  %v1087_v52 = vpop.xlane.xlu1 %1086 }
 0x2de   : > { %1191 = vst [vmem:[%s2066_s6 + $0x38] sm:$0xff] %v1159_v0  ;;  %1637 = vrcp.f32 %v1087_v52  ;;  %v1085_v7 = vpop.xlane.xlu0 %1084 }
 0x2df   : > { %v1626_v48 = vpop.eup %1625  ;;  %1190 = vst [vmem:[%s2066_s6 + $0x30] sm:$0xff] %v1158_v53  ;;  %1639 = vrcp.f32 %v1085_v7 }
 0x2e0   : > { %v1628_v20 = vpop.eup %1627  ;;  %v1161_v3 = vmul.f32 %v1626_v48, %v1975_v19 }
 0x2e1   : > { %v1160_v22 = vmul.f32 %v1628_v20, %v1977_v21  ;;  %v1091_v2 = vpop.xlane.xlu1 %1090 }
 0x2e2   : > { %1193 = vst [vmem:[%s2066_s6 + $0x48] sm:$0xff] %v1161_v3  ;;  %1641 = vrcp.f32 %v1091_v2  ;;  %v1089_v13 = vpop.xlane.xlu0 %1088 }
 0x2e3   : > { %v1630_v15 = vpop.eup %1629  ;;  %1192 = vst [vmem:[%s2066_s6 + $0x40] sm:$0xff] %v1160_v22  ;;  %1643 = vrcp.f32 %v1089_v13 }
 0x2e4   : > { %v1632_v24 = vpop.eup %1631  ;;  %v1163_v56 = vmul.f32 %v1630_v15, %v1983_v25 }
 0x2e5   : > { %v1162_v33 = vmul.f32 %v1632_v24, %v1985_v27  ;;  %v1095_v36 = vpop.xlane.xlu1 %1094 }
 0x2e6   : > { %1195 = vst [vmem:[%s2066_s6 + $0x58] sm:$0xff] %v1163_v56  ;;  %1645 = vrcp.f32 %v1095_v36  ;;  %v1093_v19 = vpop.xlane.xlu0 %1092 }
 0x2e7   : > { %v1634_v21 = vpop.eup %1633  ;;  %1194 = vst [vmem:[%s2066_s6 + $0x50] sm:$0xff] %v1162_v33  ;;  %1647 = vrcp.f32 %v1093_v19 }
 0x2e8   : > { %v1636_v37 = vpop.eup %1635  ;;  %v1165_v59 = vmul.f32 %v1634_v21, %v1991_v32 }
 0x2e9   : > { %v1164_v39 = vmul.f32 %v1636_v37, %v1993_v34  ;;  %v1099_v58 = vpop.xlane.xlu1 %1098 }
 0x2ea   : > { %1197 = vst [vmem:[%s2066_s6 + $0x68] sm:$0xff] %v1165_v59  ;;  %1649 = vrcp.f32 %v1099_v58  ;;  %v1097_v25 = vpop.xlane.xlu0 %1096 }
 0x2eb   : > { %v1638_v27 = vpop.eup %1637  ;;  %1196 = vst [vmem:[%s2066_s6 + $0x60] sm:$0xff] %v1164_v39  ;;  %1651 = vrcp.f32 %v1097_v25 }
 0x2ec   : > { %v1640_v41 = vpop.eup %1639  ;;  %v1167_v44 = vmul.f32 %v1638_v27, %v1999_v40 }
 0x2ed   : > { %v1166_v45 = vmul.f32 %v1640_v41, %v2001_v42  ;;  %v1103_v61 = vpop.xlane.xlu1 %1102 }
 0x2ee   : > { %1199 = vst [vmem:[%s2066_s6 + $0x78] sm:$0xff] %v1167_v44  ;;  %1653 = vrcp.f32 %v1103_v61  ;;  %v1101_v32 = vpop.xlane.xlu0 %1100 }
 0x2ef   : > { %v1642_v34 = vpop.eup %1641  ;;  %1198 = vst [vmem:[%s2066_s6 + $0x70] sm:$0xff] %v1166_v45  ;;  %1655 = vrcp.f32 %v1101_v32 }
 0x2f0   : > { %v1644_v46 = vpop.eup %1643  ;;  %v1169_v60 = vmul.f32 %v1642_v34, %v2007_v47 }
 0x2f1   : > { %v1168_v6 = vmul.f32 %v1644_v46, %v2009_v49  ;;  %v1107_v8 = vpop.xlane.xlu1 %1106 }
 0x2f2   : > { %1201 = vst [vmem:[%s2066_s6 + $0x88] sm:$0xff] %v1169_v60  ;;  %1657 = vrcp.f32 %v1107_v8  ;;  %v1105_v40 = vpop.xlane.xlu0 %1104 }
 0x2f3   : > { %v1646_v42 = vpop.eup %1645  ;;  %1200 = vst [vmem:[%s2066_s6 + $0x80] sm:$0xff] %v1168_v6  ;;  %1659 = vrcp.f32 %v1105_v40 }
 0x2f4   : > { %v1648_v9 = vpop.eup %1647  ;;  %v1171_v28 = vmul.f32 %v1646_v42, %v2015_v11 }
 0x2f5   : > { %v1170_v63 = vmul.f32 %v1648_v9, %v2017_v12  ;;  %v1111_v10 = vpop.xlane.xlu1 %1110 }
 0x2f6   : > { %1203 = vst [vmem:[%s2066_s6 + $0x98] sm:$0xff] %v1171_v28  ;;  %1661 = vrcp.f32 %v1111_v10  ;;  %v1109_v47 = vpop.xlane.xlu0 %1108 }
 0x2f7   : > { %v1650_v49 = vpop.eup %1649  ;;  %1202 = vst [vmem:[%s2066_s6 + $0x90] sm:$0xff] %v1170_v63  ;;  %1663 = vrcp.f32 %v1109_v47 }
 0x2f8   : > { %v1652_v62 = vpop.eup %1651  ;;  %v1173_v51 = vmul.f32 %v1650_v49, %v2023_v17 }
 0x2f9   : > { %v1172_v35 = vmul.f32 %v1652_v62, %v2025_v18  ;;  %v1115_v38 = vpop.xlane.xlu1 %1114 }
 0x2fa   : > { %1205 = vst [vmem:[%s2066_s6 + $0xa8] sm:$0xff] %v1173_v51  ;;  %1665 = vrcp.f32 %v1115_v38  ;;  %v1113_v11 = vpop.xlane.xlu0 %1112 }
 0x2fb   : > { %v1654_v12 = vpop.eup %1653  ;;  %1204 = vst [vmem:[%s2066_s6 + $0xa0] sm:$0xff] %v1172_v35  ;;  %1667 = vrcp.f32 %v1113_v11 }
 0x2fc   : > { %v1656_v50 = vpop.eup %1655  ;;  %v1175_v14 = vmul.f32 %v1654_v12, %v2031_v23 }
 0x2fd   : > { %v1174_v1 = vmul.f32 %v1656_v50, %v2033_v55  ;;  %v1119_v16 = vpop.xlane.xlu1 %1118 }
 0x2fe   : > { %1207 = vst [vmem:[%s2066_s6 + $0xb8] sm:$0xff] %v1175_v14  ;;  %1669 = vrcp.f32 %v1119_v16  ;;  %v1117_v17 = vpop.xlane.xlu0 %1116 }
 0x2ff   : > { %v1658_v18 = vpop.eup %1657  ;;  %1206 = vst [vmem:[%s2066_s6 + $0xb0] sm:$0xff] %v1174_v1  ;;  %1671 = vrcp.f32 %v1117_v17 }
 0x300   : > { %v1660_v43 = vpop.eup %1659  ;;  %v1177_v0 = vmul.f32 %v1658_v18, %v2037_v5 }
 0x301   : > { %v1176_v53 = vmul.f32 %v1660_v43, %v2039_v54 }
 0x302   : > { %1209 = vst [vmem:[%s2066_s6 + $0xc8] sm:$0xff] %v1177_v0 }
 0x303   : > { %v1662_v23 = vpop.eup %1661  ;;  %1208 = vst [vmem:[%s2066_s6 + $0xc0] sm:$0xff] %v1176_v53 }
 0x304   : > { %v1664_v55 = vpop.eup %1663  ;;  %v1179_v52 = vmul.f32 %v1662_v23, %v2043_v4 }
 0x305   : > { %v1178_v7 = vmul.f32 %v1664_v55, %v2045_v26 }
 0x306   : > { %1211 = vst [vmem:[%s2066_s6 + $0xd8] sm:$0xff] %v1179_v52 }
 0x307   : > { %v1666_v48 = vpop.eup %1665  ;;  %1210 = vst [vmem:[%s2066_s6 + $0xd0] sm:$0xff] %v1178_v7 }
 0x308   : > { %v1668_v20 = vpop.eup %1667  ;;  %v1181_v3 = vmul.f32 %v1666_v48, %v2049_v29 }
 0x309   : > { %v1180_v5 = vmul.f32 %v1668_v20, %v2051_v30 }
 0x30a   : > { %1213 = vst [vmem:[%s2066_s6 + $0xe8] sm:$0xff] %v1181_v3 }
 0x30b   : > { %v1670_v54 = vpop.eup %1669  ;;  %1212 = vst [vmem:[%s2066_s6 + $0xe0] sm:$0xff] %v1180_v5 }
 0x30c   : > { %v1672_v22 = vpop.eup %1671  ;;  %v1183_v2 = vmul.f32 %v1670_v54, %v2055_v57 }
 0x30d   : > { %v1182_v13 = vmul.f32 %v1672_v22, %v2057_v31 }
 0x30e   : > { %1215 = vst [vmem:[%s2066_s6 + $0xf8] sm:$0xff] %v1183_v2 }
 0x30f   : > { %1214 = vst [vmem:[%s2066_s6 + $0xf0] sm:$0xff] %v1182_v13 }
 0x310 PF: > { %s13_s12 = sadd.s32 1, %s1679_s12  }
 0x311   : > { %p10_p4 = scmp.ge.s32.totalorder %s13_s12, 4  }
 0x313   :  { %12 = sbr.rel (!%p10_p4) target bundleno = 1 (0x1), region = 62 }

</bundles_post_ra>
